<compile_context>
chip_gen: v6e
topology: v6e:2x2x1
jax: 0.10.0
libtpu: 0.0.40
codegen_flags: <defaults>
</compile_context>

<pallas_src>
import functools

import jax
import jax.numpy as jnp
from jax.experimental import pallas as pl
from jax.experimental.pallas import tpu as pltpu


def _round_up(x: int, m: int) -> int:
    return ((x + m - 1) // m) * m


def actor_discrete_kernel(obs_ref, w1_ref, b1_ref, w2_ref, b2_ref,
                          w3_ref, b3_ref, out_ref, *, action_dim: int):
    # Matmul inputs in bf16 (MXU fast path), accumulation in f32.
    x = obs_ref[...].astype(jnp.bfloat16)

    # l1 + ReLU (bias/ReLU in f32)
    h1 = jnp.dot(x, w1_ref[...], preferred_element_type=jnp.float32) + b1_ref[...]
    h1 = jnp.maximum(h1, 0.0)

    # l2 + ReLU
    h2 = jnp.dot(h1.astype(jnp.bfloat16), w2_ref[...],
                 preferred_element_type=jnp.float32) + b2_ref[...]
    h2 = jnp.maximum(h2, 0.0)

    # l3 logits over the lane-padded action dimension. The action mask is
    # pre-baked into b3 (padded columns hold -1e30, padded w3 columns are 0),
    # so no iota/where is needed here.
    logits = jnp.dot(h2.astype(jnp.bfloat16), w3_ref[...],
                     preferred_element_type=jnp.float32) + b3_ref[...]

    # Numerically stable softmax over dim=1; padded columns exp-underflow to 0.
    m = jnp.max(logits, axis=-1, keepdims=True)
    e = jnp.exp(logits - m)
    denom = jnp.sum(e, axis=-1, keepdims=True)
    inv = pl.reciprocal(denom, approx=False)   # exact normalization (EUP)
    probs = e * inv

    # Narrow store: only the real action columns are written back to HBM.
    out_ref[...] = probs[:, :action_dim].astype(out_ref.dtype)


def actor_discrete_forward(obs, params, *, batch_tile: int = 2048):
    """obs: (B, obs_dim) float32. params: dict with w1,b1,w2,b2,w3,b3.

    w_i are (in_features, out_features) float32; b_i are (1, out_features)
    float32. Returns a_prob: (B, action_dim) float32.
    """
    B, obs_dim = obs.shape
    hidden_1 = params["w1"].shape[1]
    hidden_2 = params["w2"].shape[1]
    action_dim = params["w3"].shape[1]

    # Lane-pad the internal logit width to a multiple of 128 (MXU/vreg dense);
    # the output itself stays narrow (action_dim columns).
    a_pad = _round_up(action_dim, 128)

    # Batch tile: multiple of 8. For moderate B use a single tile so the grid
    # collapses to one step and padding is only up to the next sublane (8).
    batch_tile = max(8, _round_up(batch_tile, 8))
    tb_single = _round_up(B, 8)
    tb = tb_single if tb_single <= batch_tile else batch_tile
    b_pad = _round_up(B, tb)
    num_tiles = b_pad // tb

    obs_p = obs if b_pad == B else jnp.pad(obs, ((0, b_pad - B), (0, 0)))

    # bf16 weights for the MXU; biases stay f32 as (1, H) VMEM rows.
    w1b = params["w1"].astype(jnp.bfloat16)
    w2b = params["w2"].astype(jnp.bfloat16)
    w3b = params["w3"].astype(jnp.bfloat16)
    b1, b2, b3 = params["b1"], params["b2"], params["b3"]
    if a_pad != action_dim:
        # Zero weight columns + large *finite* negative bias = baked action
        # mask (exp underflows to exactly 0 after the max-subtract).
        w3b = jnp.pad(w3b, ((0, 0), (0, a_pad - action_dim)))
        b3 = jnp.pad(b3, ((0, 0), (0, a_pad - action_dim)),
                     constant_values=-1e30)

    kernel = functools.partial(actor_discrete_kernel, action_dim=action_dim)

    # Weights/biases: constant index_map -> DMA'd once, resident across tiles.
    resident = lambda shape: pl.BlockSpec(shape, lambda i: (0, 0))

    weight_bytes = (w1b.size * 2 + w2b.size * 2 + w3b.size * 2
                    + b1.size * 4 + b2.size * 4 + b3.size * 4)
    cost = pl.CostEstimate(
        flops=2 * b_pad * (obs_dim * hidden_1
                           + hidden_1 * hidden_2
                           + hidden_2 * a_pad),
        transcendentals=b_pad * a_pad,
        bytes_accessed=(b_pad * obs_dim * 4          # obs read
                        + weight_bytes               # resident params
                        + b_pad * action_dim * 4),   # narrow output write
    )

    out = pl.pallas_call(
        kernel,
        out_shape=jax.ShapeDtypeStruct((b_pad, action_dim), jnp.float32),
        grid=(num_tiles,),
        in_specs=[
            pl.BlockSpec((tb, obs_dim), lambda i: (i, 0)),   # streamed obs tile
            resident((obs_dim, hidden_1)),
            resident((1, hidden_1)),
            resident((hidden_1, hidden_2)),
            resident((1, hidden_2)),
            resident((hidden_2, a_pad)),
            resident((1, a_pad)),
        ],
        out_specs=pl.BlockSpec((tb, action_dim), lambda i: (i, 0)),
        compiler_params=pltpu.CompilerParams(
            dimension_semantics=("parallel",),
        ),
        cost_estimate=cost,
    )(obs_p, w1b, b1, w2b, b2, w3b, b3)

    return out if b_pad == B else out[:B]


def init_params(key, obs_dim, action_dim, hidden_1=128, hidden_2=128):
    """Deterministic init mimicking nn.Linear's U(-1/sqrt(fan_in), 1/sqrt(fan_in)).

    Weights stored as (in_features, out_features) for the kernel.
    """
    ks = jax.random.split(key, 6)

    def linear(kw, kb, fan_in, fan_out):
        bound = 1.0 / jnp.sqrt(jnp.float32(fan_in))
        w = jax.random.uniform(kw, (fan_in, fan_out), jnp.float32, -bound, bound)
        b = jax.random.uniform(kb, (1, fan_out), jnp.float32, -bound, bound)
        return w, b

    w1, b1 = linear(ks[0], ks[1], obs_dim, hidden_1)
    w2, b2 = linear(ks[2], ks[3], hidden_1, hidden_2)
    w3, b3 = linear(ks[4], ks[5], hidden_2, action_dim)
    return {"w1": w1, "b1": b1, "w2": w2, "b2": b2, "w3": w3, "b3": b3}


def _ref_f32(obs, p):
    # Pure-f32 reference of the original PyTorch forward.
    h1 = jnp.maximum(obs @ p["w1"] + p["b1"], 0.0)
    h2 = jnp.maximum(h1 @ p["w2"] + p["b2"], 0.0)
    return jax.nn.softmax(h2 @ p["w3"] + p["b3"], axis=1)


def _ref_bf16(obs, p):
    # Mirrors the kernel numerics: bf16 matmul inputs, f32 accumulation/softmax.
    h1 = jnp.maximum(
        jnp.dot(obs.astype(jnp.bfloat16), p["w1"].astype(jnp.bfloat16),
                preferred_element_type=jnp.float32) + p["b1"], 0.0)
    h2 = jnp.maximum(
        jnp.dot(h1.astype(jnp.bfloat16), p["w2"].astype(jnp.bfloat16),
                preferred_element_type=jnp.float32) + p["b2"], 0.0)
    logits = jnp.dot(h2.astype(jnp.bfloat16), p["w3"].astype(jnp.bfloat16),
                     preferred_element_type=jnp.float32) + p["b3"]
    return jax.nn.softmax(logits, axis=1)


def _check(a_prob, obs, params, B, action_dim):
    assert a_prob.shape == (B, action_dim)
    assert jnp.allclose(jnp.sum(a_prob, axis=1), 1.0, atol=1e-5)
    assert jnp.allclose(a_prob, _ref_bf16(obs, params), atol=5e-3)
    assert jnp.allclose(a_prob, _ref_f32(obs, params), atol=3e-2)


if __name__ == "__main__":
    key = jax.random.PRNGKey(0)
    k_obs, k_params, k_obs_big = jax.random.split(key, 3)

    obs_dim = 32
    action_dim = 4
    hidden_1 = 128
    hidden_2 = 128
    params = init_params(k_params, obs_dim, action_dim, hidden_1, hidden_2)

    # --- Small inference-style batch (B=2 -> one 8-row tile, 1 grid step). ---
    B = 2
    obs = jax.random.normal(k_obs, (B, obs_dim), dtype=jnp.float32)
    a_prob = jax.block_until_ready(actor_discrete_forward(obs, params))
    _check(a_prob, obs, params, B, action_dim)

    # --- Rollout-style batch (B=300 -> single 304-row tile, 1 grid step). ---
    B_big = 300
    obs_big = jax.random.normal(k_obs_big, (B_big, obs_dim), dtype=jnp.float32)
    a_prob_big = jax.block_until_ready(actor_discrete_forward(obs_big, params))
    _check(a_prob_big, obs_big, params, B_big, action_dim)

    # --- Force the multi-tile streaming path (batch_tile=128 -> 3 grid steps). ---
    a_prob_tiled = jax.block_until_ready(
        actor_discrete_forward(obs_big, params, batch_tile=128))
    _check(a_prob_tiled, obs_big, params, B_big, action_dim)

    print("KERNEL_OK")
</pallas_src>

<mosaic_0001>
module attributes {stable_mosaic.version = 11 : i64} {
  func.func @actor_discrete_kernel(%arg0: i32, %arg1: memref<8x32xf32, #tpu.memory_space<vmem>>, %arg2: memref<32x128xbf16, #tpu.memory_space<vmem>>, %arg3: memref<1x128xf32, #tpu.memory_space<vmem>>, %arg4: memref<128x128xbf16, #tpu.memory_space<vmem>>, %arg5: memref<1x128xf32, #tpu.memory_space<vmem>>, %arg6: memref<128x128xbf16, #tpu.memory_space<vmem>>, %arg7: memref<1x128xf32, #tpu.memory_space<vmem>>, %arg8: memref<8x4xf32, #tpu.memory_space<vmem>>) attributes {dimension_semantics = [#tpu.dimension_semantics<parallel>], iteration_bounds = array<i64: 1>, scalar_prefetch = 0 : i64, scratch_operands = 0 : i64, tpu.core_type = #tpu.core_type<tc>, window_params = [{transform_indices = @transform_0, window_bounds = array<i64: 8, 32>}, {pipeline_mode = #tpu.pipeline_mode<synchronous>, transform_indices = @transform_1, window_bounds = array<i64: 32, 128>}, {pipeline_mode = #tpu.pipeline_mode<synchronous>, transform_indices = @transform_2, window_bounds = array<i64: 1, 128>}, {pipeline_mode = #tpu.pipeline_mode<synchronous>, transform_indices = @transform_3, window_bounds = array<i64: 128, 128>}, {pipeline_mode = #tpu.pipeline_mode<synchronous>, transform_indices = @transform_4, window_bounds = array<i64: 1, 128>}, {pipeline_mode = #tpu.pipeline_mode<synchronous>, transform_indices = @transform_5, window_bounds = array<i64: 128, 128>}, {pipeline_mode = #tpu.pipeline_mode<synchronous>, transform_indices = @transform_6, window_bounds = array<i64: 1, 128>}, {transform_indices = @transform_7, window_bounds = array<i64: 8, 4>}]} {
    %c0 = arith.constant 0 : index
    %c0_0 = arith.constant 0 : index
    %0 = vector.load %arg1[%c0, %c0_0] : memref<8x32xf32, #tpu.memory_space<vmem>>, vector<8x32xf32>
    %1 = arith.truncf %0 : vector<8x32xf32> to vector<8x32xbf16>
    %c0_1 = arith.constant 0 : index
    %c0_2 = arith.constant 0 : index
    %2 = vector.load %arg2[%c0_1, %c0_2] : memref<32x128xbf16, #tpu.memory_space<vmem>>, vector<32x128xbf16>
    %cst = arith.constant dense<0.000000e+00> : vector<8x128xf32>
    %3 = tpu.matmul %1, %2, %cst {dimension_numbers = #tpu.dot_dimension_numbers<[1], [0], [0], [1], [0, 0, 1, 1], [], []>} : vector<8x32xbf16>, vector<32x128xbf16>, vector<8x128xf32> -> vector<8x128xf32>
    %c0_3 = arith.constant 0 : index
    %c0_4 = arith.constant 0 : index
    %4 = vector.load %arg3[%c0_3, %c0_4] : memref<1x128xf32, #tpu.memory_space<vmem>>, vector<1x128xf32>
    %5 = vector.broadcast %4 : vector<1x128xf32> to vector<8x128xf32>
    %6 = arith.addf %3, %5 : vector<8x128xf32>
    %cst_5 = arith.constant 0.000000e+00 : f32
    %7 = vector.broadcast %cst_5 : f32 to vector<8x128xf32>
    %8 = arith.maximumf %6, %7 : vector<8x128xf32>
    %9 = arith.truncf %8 : vector<8x128xf32> to vector<8x128xbf16>
    %c0_6 = arith.constant 0 : index
    %c0_7 = arith.constant 0 : index
    %10 = vector.load %arg4[%c0_6, %c0_7] : memref<128x128xbf16, #tpu.memory_space<vmem>>, vector<128x128xbf16>
    %cst_8 = arith.constant dense<0.000000e+00> : vector<8x128xf32>
    %11 = tpu.matmul %9, %10, %cst_8 {dimension_numbers = #tpu.dot_dimension_numbers<[1], [0], [0], [1], [0, 0, 1, 1], [], []>} : vector<8x128xbf16>, vector<128x128xbf16>, vector<8x128xf32> -> vector<8x128xf32>
    %c0_9 = arith.constant 0 : index
    %c0_10 = arith.constant 0 : index
    %12 = vector.load %arg5[%c0_9, %c0_10] : memref<1x128xf32, #tpu.memory_space<vmem>>, vector<1x128xf32>
    %13 = vector.broadcast %12 : vector<1x128xf32> to vector<8x128xf32>
    %14 = arith.addf %11, %13 : vector<8x128xf32>
    %cst_11 = arith.constant 0.000000e+00 : f32
    %15 = vector.broadcast %cst_11 : f32 to vector<8x128xf32>
    %16 = arith.maximumf %14, %15 : vector<8x128xf32>
    %17 = arith.truncf %16 : vector<8x128xf32> to vector<8x128xbf16>
    %c0_12 = arith.constant 0 : index
    %c0_13 = arith.constant 0 : index
    %18 = vector.load %arg6[%c0_12, %c0_13] : memref<128x128xbf16, #tpu.memory_space<vmem>>, vector<128x128xbf16>
    %cst_14 = arith.constant dense<0.000000e+00> : vector<8x128xf32>
    %19 = tpu.matmul %17, %18, %cst_14 {dimension_numbers = #tpu.dot_dimension_numbers<[1], [0], [0], [1], [0, 0, 1, 1], [], []>} : vector<8x128xbf16>, vector<128x128xbf16>, vector<8x128xf32> -> vector<8x128xf32>
    %c0_15 = arith.constant 0 : index
    %c0_16 = arith.constant 0 : index
    %20 = vector.load %arg7[%c0_15, %c0_16] : memref<1x128xf32, #tpu.memory_space<vmem>>, vector<1x128xf32>
    %21 = vector.broadcast %20 : vector<1x128xf32> to vector<8x128xf32>
    %22 = arith.addf %19, %21 : vector<8x128xf32>
    %cst_17 = arith.constant dense<0xFF800000> : vector<8xf32>
    %23 = vector.multi_reduction <maximumf>, %22, %cst_17 [1] : vector<8x128xf32> to vector<8xf32>
    %24 = vector.shape_cast %23 : vector<8xf32> to vector<8x1xf32>
    %25 = vector.broadcast %24 : vector<8x1xf32> to vector<8x128xf32>
    %26 = arith.subf %22, %25 : vector<8x128xf32>
    %27 = math.exp %26 : vector<8x128xf32>
    %cst_18 = arith.constant dense<0.000000e+00> : vector<8xf32>
    %28 = vector.multi_reduction <add>, %27, %cst_18 [1] : vector<8x128xf32> to vector<8xf32>
    %29 = vector.shape_cast %28 : vector<8xf32> to vector<8x1xf32>
    %30 = tpu.reciprocal %29 : vector<8x1xf32> -> vector<8x1xf32>
    %31 = vector.broadcast %30 : vector<8x1xf32> to vector<8x128xf32>
    %32 = arith.mulf %27, %31 : vector<8x128xf32>
    %33 = vector.extract_strided_slice %32 {offsets = [0, 0], sizes = [8, 4], strides = [1, 1]} : vector<8x128xf32> to vector<8x4xf32>
    %c0_19 = arith.constant 0 : index
    %c0_20 = arith.constant 0 : index
    %34 = vector.load %arg8[%c0_19, %c0_20] : memref<8x4xf32, #tpu.memory_space<vmem>>, vector<8x4xf32>
    tpu.vector_store %arg8[%c0_19, %c0_20], %33 {strides = array<i32>} : memref<8x4xf32, #tpu.memory_space<vmem>>, vector<8x4xf32>,
    return
  }
  func.func @transform_0(%arg0: i32) -> (i32, i32) {
    %c0_i32 = arith.constant 0 : i32
    %c0_i32_0 = arith.constant 0 : i32
    return %arg0, %c0_i32 : i32, i32
  }
  func.func @transform_1(%arg0: i32) -> (i32, i32) {
    %c0_i32 = arith.constant 0 : i32
    %c0_i32_0 = arith.constant 0 : i32
    %c0_i32_1 = arith.constant 0 : i32
    return %c0_i32, %c0_i32_0 : i32, i32
  }
  func.func @transform_2(%arg0: i32) -> (i32, i32) {
    %c0_i32 = arith.constant 0 : i32
    %c0_i32_0 = arith.constant 0 : i32
    %c0_i32_1 = arith.constant 0 : i32
    return %c0_i32, %c0_i32_0 : i32, i32
  }
  func.func @transform_3(%arg0: i32) -> (i32, i32) {
    %c0_i32 = arith.constant 0 : i32
    %c0_i32_0 = arith.constant 0 : i32
    %c0_i32_1 = arith.constant 0 : i32
    return %c0_i32, %c0_i32_0 : i32, i32
  }
  func.func @transform_4(%arg0: i32) -> (i32, i32) {
    %c0_i32 = arith.constant 0 : i32
    %c0_i32_0 = arith.constant 0 : i32
    %c0_i32_1 = arith.constant 0 : i32
    return %c0_i32, %c0_i32_0 : i32, i32
  }
  func.func @transform_5(%arg0: i32) -> (i32, i32) {
    %c0_i32 = arith.constant 0 : i32
    %c0_i32_0 = arith.constant 0 : i32
    %c0_i32_1 = arith.constant 0 : i32
    return %c0_i32, %c0_i32_0 : i32, i32
  }
  func.func @transform_6(%arg0: i32) -> (i32, i32) {
    %c0_i32 = arith.constant 0 : i32
    %c0_i32_0 = arith.constant 0 : i32
    %c0_i32_1 = arith.constant 0 : i32
    return %c0_i32, %c0_i32_0 : i32, i32
  }
  func.func @transform_7(%arg0: i32) -> (i32, i32) {
    %c0_i32 = arith.constant 0 : i32
    %c0_i32_0 = arith.constant 0 : i32
    return %arg0, %c0_i32 : i32, i32
  }
}

</mosaic_0001>

<bundles_post_ra>
// kernel: tpu_custom_call.1
= control target key start
LH: loop header
LB: loop body
LE: loop exit
PB: predicated region body
PF: predicated region fallthrough
CT: control target
= control target key end

     0   :  { %12 = vsyncpa [#allocation3], 0  ;;  %s705_s0 = inlined_call_operand.hbm [shape: f32[8,32], index: 0, kind: input, shape index: {}]   ;;  %s706_s1 = inlined_call_operand.hbm [shape: bf16[32,128], index: 1, kind: input, shape index: {}]   ;;  %s707_s2 = inlined_call_operand.vmem [shape: f32[1,128], index: 2, kind: input, shape index: {}]   ;;  %s708_s3 = inlined_call_operand.hbm [shape: bf16[128,128], index: 3, kind: input, shape index: {}]   ;;  %s709_s4 = inlined_call_operand.vmem [shape: f32[1,128], index: 4, kind: input, shape index: {}]   ;;  %s710_s5 = inlined_call_operand.hbm [shape: bf16[128,128], index: 5, kind: input, shape index: {}]   ;;  %s711_s6 = inlined_call_operand.vmem [shape: f32[1,128], index: 6, kind: input, shape index: {}]   ;;  %s712_s7 = inlined_call_operand.vmem [shape: f32[8,4], index: 7, kind: output, shape index: {}]  }
   0x1   :  { %13 = vsyncpa [#allocation5], 0 }
   0x2   :  { %14 = vsyncpa [#allocation8], 0  ;;  %s600_s24 = smov [#allocation4]  }
   0x3   :  { %s30_s25 = sshll.u32 %s600_s24, 4  ;;  %s31_s25 = int_to_ptr.vmem [resolvable:$true] %s30_s25 }
   0x4   :  { %s522_s26 = scalar_lea.vmem %s31_s25, 256  ;;  %p527_p1 = scmp.lt.s32.totalorder %s31_s25, %s31_s25 }
   0x5   :  { %p523_p0 = scmp.ne.s32.totalorder %s31_s25, %s522_s26  ;;  %p528_p2 = scmp.lt.s32.totalorder %s522_s26, %s522_s26 }
   0x7   :  { %p529_p3 = por %p528_p2, %p527_p1 }
   0x9   :  { %p530_p4 = pnand %p529_p3, %p523_p0 }
   0xb   :  { %533 = shalt.err (!%p530_p4)
}
   0xc   :  { %s601_s27 = smov 64   ;;  %s602_s28 = smov 4  }
   0xd   :  { %36 = dma.hbm_to_vmem [thread:$0]  %s706_s1, 256, %s31_s25, [#allocation5], %s601_s27, %s601_s27, %s602_s28  }
   0xe   :  { %s603_s8 = smov [#allocation2]   ;;  %s604_s10 = smov [#allocation6]  }
   0xf   :  { %s21_s9 = sshll.u32 %s603_s8, 4  ;;  %s44_s11 = sshll.u32 %s604_s10, 4  ;;  %s22_s9 = int_to_ptr.vmem [resolvable:$true] %s21_s9  ;;  %s45_s11 = int_to_ptr.vmem [resolvable:$true] %s44_s11 }
  0x10   :  { %s542_s12 = scalar_lea.vmem %s22_s9, 128  ;;  %p547_p6 = scmp.lt.s32.totalorder %s22_s9, %s22_s9 }
  0x11   :  { %p543_p5 = scmp.ne.s32.totalorder %s22_s9, %s542_s12  ;;  %p548_p7 = scmp.lt.s32.totalorder %s542_s12, %s542_s12 }
  0x13   :  { %p549_p8 = por %p548_p7, %p547_p6 }
  0x15   :  { %p550_p9 = pnand %p549_p8, %p543_p5 }
  0x17   :  { %553 = shalt.err (!%p550_p9)
}
  0x18   :  { %24 = dma.hbm_to_vmem [thread:$0]  %s705_s0, 128, %s22_s9, [#allocation3]  }
  0x19   :  { %s562_s15 = scalar_lea.vmem %s45_s11, 1024  ;;  %p567_p11 = scmp.lt.s32.totalorder %s45_s11, %s45_s11 }
  0x1a   :  { %p563_p10 = scmp.ne.s32.totalorder %s45_s11, %s562_s15  ;;  %p568_p12 = scmp.lt.s32.totalorder %s562_s15, %s562_s15 }
  0x1c   :  { %p569_p13 = por %p568_p12, %p567_p11 }
  0x1e   :  { %p570_p0 = pnand %p569_p13, %p563_p10 }
  0x20   :  { %573 = shalt.err (!%p570_p0)
}
  0x21   :  { %50 = dma.hbm_to_vmem [thread:$0]  %s708_s3, 1024, %s45_s11, [#allocation5], %s601_s27, %s601_s27, %s602_s28  }
  0x22   :  { %s605_s17 = smov [#allocation7]  }
  0x23   :  { %s58_s18 = sshll.u32 %s605_s17, 4  ;;  %s59_s18 = int_to_ptr.vmem [resolvable:$true] %s58_s18 }
  0x24   :  { %s582_s19 = scalar_lea.vmem %s59_s18, 1024  ;;  %p587_p2 = scmp.lt.s32.totalorder %s59_s18, %s59_s18 }
  0x25   :  { %p583_p1 = scmp.ne.s32.totalorder %s59_s18, %s582_s19  ;;  %p588_p3 = scmp.lt.s32.totalorder %s582_s19, %s582_s19 }
  0x27   :  { %p589_p4 = por %p588_p3, %p587_p2 }
  0x29   :  { %p590_p5 = pnand %p589_p4, %p583_p1 }
  0x2b   :  { %593 = shalt.err (!%p590_p5)
}
  0x2c   :  { %64 = dma.hbm_to_vmem [thread:$0]  %s710_s5, 1024, %s59_s18, [#allocation8], %s601_s27, %s601_s27, %s602_s28  }
  0x2d   :  { %594 = dma.done.wait [#allocation3], 128  }
  0x2e   :  { %595 = vsyncadd [#allocation3], 4294967168 }
  0x2f   :  { %596 = dma.done.wait [#allocation5], 1280  }
  0x30   :  { %597 = vsyncadd [#allocation5], 4294966016 }
  0x31   :  { %598 = dma.done.wait [#allocation8], 1024  }
  0x32   :  { %599 = vsyncadd [#allocation8], 4294966272  ;;  %v606_v0 = vmov 0.0   ;;  %vm607_vm0 = vmmov 0   ;;  %v492_v1 = vld [vmem:[#allocation4 + $0x8] sm:$0xff]   ;;  %v493_v2 = vld [vmem:[#allocation4] sm:$0xff]  }
  0x33   :  { %436 = vmatprep.subr.bf16.mxu0 %v606_v0  ;;  %440 = vmatprep.mubr.msk.bf16.mxu0 %vm607_vm0, %v606_v0  ;;  %v80_v3 = vld [vmem:[#allocation2] sm:$0xff]  ;;  %v494_v4 = vld [vmem:[#allocation6 + $0x38] sm:$0xff]   ;;  %v495_v6 = vld [vmem:[#allocation6 + $0x30] sm:$0xff]   ;;  %vm105_vm1 = vcmask 261120   ;;  %vm384_vm2 = vcmask 31744  }
  0x34   :  { %444 = vmatprep.subr.bf16.mxu1 %v606_v0  ;;  %460 = vmatprep.mubr.msk.bf16.mxu1 %vm607_vm0, %v606_v0  ;;  %v81_v5 = vpack.c.bf16 %v80_v3, %v80_v3  ;;  %v496_v7 = vld [vmem:[#allocation6 + $0x28] sm:$0xff]   ;;  %v497_v8 = vld [vmem:[#allocation6 + $0x20] sm:$0xff]   ;;  %v498_v9 = vld [vmem:[#allocation6 + $0x18] sm:$0xff]  }
  0x35   :  { %437 = vmatpush3.bf16.msra.mxu0 %v492_v1  ;;  %445 = vmatpush3.bf16.msra.mxu1 %v494_v4  ;;  %v499_v10 = vld [vmem:[#allocation6 + $0x10] sm:$0xff]   ;;  %v500_v11 = vld [vmem:[#allocation6 + $0x8] sm:$0xff]   ;;  %v501_v12 = vld [vmem:[#allocation6] sm:$0xff]  }
  0x36   :  { %438 = vmatprep.subr.bf16.mxu0 %v606_v0  ;;  %446 = vmatprep.subr.bf16.mxu1 %v606_v0  ;;  %v502_v13 = vld [vmem:[#allocation7 + $0x38] sm:$0xff]   ;;  %v503_v14 = vld [vmem:[#allocation7 + $0x30] sm:$0xff]   ;;  %v504_v15 = vld [vmem:[#allocation7 + $0x28] sm:$0xff]  }
  0x37   :  { %v505_v16 = vld [vmem:[#allocation7 + $0x20] sm:$0xff]   ;;  %v506_v17 = vld [vmem:[#allocation7 + $0x18] sm:$0xff]   ;;  %v507_v18 = vld [vmem:[#allocation7 + $0x10] sm:$0xff]  }
  0x38   :  { %v393_v19 = vld [vmem:[%s707_s2] ss:$0 sm:$0xff]  ;;  %v509_v28 = vld [vmem:[#allocation7] sm:$0xff]  }
  0x39   :  { %439 = vmatpush3.bf16.msra.mxu0 %v493_v2  ;;  %447 = vmatpush3.bf16.msra.mxu1 %v495_v6  ;;  %v508_v27 = vld [vmem:[#allocation7 + $0x8] sm:$0xff]  }
  0x3a   :  { %464 = vmatprep.subr.bf16.mxu0 %v606_v0  ;;  %448 = vmatprep.subr.bf16.mxu1 %v606_v0  ;;  %v397_v29 = vld [vmem:[%s709_s4] ss:$0 sm:$0xff] }
  0x3b   :  { %v406_v37 = vld [vmem:[%s711_s6] ss:$0 sm:$0xff] }
  0x3c   :  { %441 = vmatmul.mubr.msk.bf16.vlgmr.msra.gmra.mxu0 %vm105_vm1, %v81_v5 }
  0x3d   :  { %480 = vmatprep.mubr.msk.bf16.mxu0 %vm607_vm0, %v606_v0  ;;  %449 = vmatpush3.bf16.msra.mxu1 %v496_v7 }
  0x3e   :  { %450 = vmatprep.subr.bf16.mxu1 %v606_v0  ;;  %465 = vmatpush3.bf16.msra.mxu0 %v502_v13 }
  0x3f   :  { %466 = vmatprep.subr.bf16.mxu0 %v606_v0 }
  0x41   :  { %451 = vmatpush3.bf16.msra.mxu1 %v497_v8 }
  0x42   :  { %452 = vmatprep.subr.bf16.mxu1 %v606_v0  ;;  %467 = vmatpush3.bf16.msra.mxu0 %v503_v14 }
  0x43   :  { %468 = vmatprep.subr.bf16.mxu0 %v606_v0 }
  0x45   :  { %453 = vmatpush3.bf16.msra.mxu1 %v498_v9 }
  0x46   :  { %454 = vmatprep.subr.bf16.mxu1 %v606_v0  ;;  %469 = vmatpush3.bf16.msra.mxu0 %v504_v15 }
  0x47   :  { %470 = vmatprep.subr.bf16.mxu0 %v606_v0 }
  0x49   :  { %455 = vmatpush3.bf16.msra.mxu1 %v499_v10 }
  0x4a   :  { %456 = vmatprep.subr.bf16.mxu1 %v606_v0  ;;  %471 = vmatpush3.bf16.msra.mxu0 %v505_v16 }
  0x4b   :  { %472 = vmatprep.subr.bf16.mxu0 %v606_v0 }
  0x4d   :  { %457 = vmatpush3.bf16.msra.mxu1 %v500_v11 }
  0x4e   :  { %458 = vmatprep.subr.bf16.mxu1 %v606_v0  ;;  %473 = vmatpush3.bf16.msra.mxu0 %v506_v17 }
  0x4f   :  { %474 = vmatprep.subr.bf16.mxu0 %v606_v0 }
  0x51   :  { %459 = vmatpush3.bf16.msra.mxu1 %v501_v12 }
  0x52   :  { %475 = vmatpush3.bf16.msra.mxu0 %v507_v18 }
  0x53   :  { %476 = vmatprep.subr.bf16.mxu0 %v606_v0 }
  0x56   :  { %477 = vmatpush3.bf16.msra.mxu0 %v508_v27 }
  0x57   :  { %478 = vmatprep.subr.bf16.mxu0 %v606_v0 }
  0x5a   :  { %479 = vmatpush3.bf16.msra.mxu0 %v509_v28 }
  0xfc   :  { %v143_v20 = vpop.f32.mrf.mxu0 }
  0xfd   :  { %v144_v21 = vadd.f32 %v393_v19, %v143_v20 }
  0xfe   :  { %v442_v22 = vpop.f32.mrf.mxu0 }
  0xff   :  { %v149_v23 = vmax.f32 %v144_v21, 0.0 }
 0x100   :  { %v146_v24 = vpop.f32.mrf.mxu0 }
 0x101   :  { %v150_v25 = vpack.c.bf16 %v149_v23, %v149_v23 }
 0x102   :  { %v443_v26 = vpop.f32.mrf.mxu0 }
 0x103   :  { %461 = vmatmul.mubr.bf16.vlgmr.msra.gmra.mxu1 %v150_v25 }
 0x1c3   :  { %v256_v30 = vpop.f32.mrf.mxu1 }
 0x1c4   :  { %v257_v31 = vadd.f32 %v397_v29, %v256_v30 }
 0x1c5   :  { %v462_v32 = vpop.f32.mrf.mxu1 }
 0x1c6   :  { %v262_v33 = vmax.f32 %v257_v31, 0.0 }
 0x1c7   :  { %v259_v34 = vpop.f32.mrf.mxu1 }
 0x1c8   :  { %v263_v35 = vpack.c.bf16 %v262_v33, %v262_v33 }
 0x1c9   :  { %v463_v36 = vpop.f32.mrf.mxu1 }
 0x1ca   :  { %481 = vmatmul.mubr.bf16.vlgmr.msra.gmra.mxu0 %v263_v35 }
 0x28a   :  { %v369_v38 = vpop.f32.mrf.mxu0 }
 0x28b   :  { %v370_v39 = vadd.f32 %v406_v37, %v369_v38 }
 0x28c   :  { %v482_v40 = vpop.f32.mrf.mxu0 }
 0x28d   :  { %375 = vmax.xlane.f32.xlu0 %v370_v39 }
 0x28e   :  { %v372_v41 = vpop.f32.mrf.mxu0 }
 0x290   :  { %v483_v42 = vpop.f32.mrf.mxu0 }
 0x316   :  { %v376_v43 = vpop.xlane.xlu0 %375 }
 0x317   :  { %v377_v44 = vsub.f32 %v370_v39, %v376_v43 }
 0x319   :  { %v378_v45 = vmul.f32 1.442695, %v377_v44 }
 0x31b   :  { %510 = vpow2.f32 %v378_v45 }
 0x328   :  { %v511_v46 = vpop.eup %510 }
 0x329   :  { %380 = vadd.xlane.f32.xlu0 %v511_v46 }
 0x3b2   :  { %v381_v47 = vpop.xlane.xlu0 %380 }
 0x3b3   :  { %512 = vrcp.f32 %v381_v47 }
 0x3c0   :  { %v513_v48 = vpop.eup %512 }
 0x3c1   :  { %v383_v49 = vmul.f32 %v513_v48, %v511_v46 }
 0x3c3   :  { %385 = vst.msk [vmem:[%s712_s7] sm:$0xff] %vm384_vm2, %v383_v49 }
 0x3c4   :  { %390 = vsyncpa [#allocation3], 1 }
 0x3c5   :  { %391 = vsyncpa [#allocation5], 1 }
 0x3c6   :  { %392 = vsyncpa [#allocation8], 1 }

</bundles_post_ra>
